<compile_context>
chip_gen: v6e
topology: v6e:2x2x1
jax: 0.10.0
libtpu: 0.0.40
codegen_flags: <defaults>
</compile_context>

<pallas_src>
import functools

import jax
import jax.numpy as jnp
from jax.experimental import pallas as pl
from jax.experimental.pallas import tpu as pltpu


def _round_up(x, m):
    return (x + m - 1) // m * m


# ----------------------------------------------------------------------------
# Fused kernel.  Grid = (B,); one whole image per step.
#   xcol_ref  : [1, H*W, Kp]   bf16   (im2col patches, K zero-padded to Kp)
#   wtap_ref  : [Kp, Cp]       bf16   (conv taps, channels zero-padded to Cp)
#   bconv_ref : [1, Cp]        f32
#   wh_ref    : [Cp, Np]       f32    (three heads concatenated, zero-padded)
#   bh_ref    : [1, Np]        f32
#   o_ref     : [1, 1, Np]     f32    (per-image logits, lane-dense)
# ----------------------------------------------------------------------------
def _fused_kernel(xcol_ref, wtap_ref, bconv_ref, wh_ref, bh_ref, o_ref, *, inv_hw):
    # Single K=Kp MXU matmul for the whole 3x3 conv of this image.
    conv = jnp.dot(xcol_ref[0], wtap_ref[...],
                   preferred_element_type=jnp.float32)           # [H*W, Cp] f32
    # f32 epilogue: bias + ReLU, then global average pool.
    conv = jnp.maximum(conv + bconv_ref[...], 0.0)
    feats = jnp.sum(conv, axis=0, keepdims=True) * inv_hw        # [1, Cp]
    # All three classifier heads in one lane-dense matmul + single store.
    o_ref[0] = jnp.dot(feats, wh_ref[...],
                       preferred_element_type=jnp.float32) + bh_ref[...]


# ----------------------------------------------------------------------------
# Wrapper
# ----------------------------------------------------------------------------
def my_classifier_model_forward(image, params):
    """image: [B, C_in, H, W] float32 (NCHW).  Returns (out1, out2, out3)."""
    B, C_in, H, W = image.shape
    w_conv = params["w_conv"]                      # [C_feat, C_in, 3, 3] (PyTorch OIHW)
    b_conv = params["b_conv"]                      # [C_feat]
    C_feat = w_conv.shape[0]
    n1 = params["w1"].shape[1]
    n2 = params["w2"].shape[1]
    n3 = params["w3"].shape[1]
    n_total = n1 + n2 + n3

    HW = H * W
    K = 9 * C_in
    Kp = _round_up(K, 128)          # lane-dense im2col contraction
    Cp = _round_up(C_feat, 128)     # lane-dense feature channels
    Np = _round_up(n_total, 128)    # lane-dense head output

    # --- im2col in the wrapper (single pass; tiny for these image sizes). ---
    # NCHW -> NHWC, zero-pad spatially by 1, gather the 9 shifted views and
    # concatenate along channels with (kh, kw, c) ordering (kh outermost).
    x = jnp.transpose(image, (0, 2, 3, 1))                          # [B, H, W, C_in]
    xp = jnp.pad(x, ((0, 0), (1, 1), (1, 1), (0, 0)))               # [B, H+2, W+2, C_in]
    cols = [xp[:, kh:kh + H, kw:kw + W, :]
            for kh in range(3) for kw in range(3)]                  # 9 x [B, H, W, C_in]
    x_cols = jnp.concatenate(cols, axis=-1).reshape(B, HW, K)
    x_cols = jnp.pad(x_cols, ((0, 0), (0, 0), (0, Kp - K))).astype(jnp.bfloat16)

    # Conv taps: OIHW -> [3,3,C_in,C_feat] -> [9*C_in, C_feat], zero-padded.
    w_taps = jnp.transpose(w_conv, (2, 3, 1, 0)).reshape(K, C_feat)
    w_taps = jnp.pad(w_taps, ((0, Kp - K), (0, Cp - C_feat))).astype(jnp.bfloat16)
    b2d = jnp.pad(b_conv.reshape(1, C_feat),
                  ((0, 0), (0, Cp - C_feat))).astype(jnp.float32)

    # Three heads concatenated into one lane-dense matmul (split afterwards).
    wh = jnp.concatenate([params["w1"], params["w2"], params["w3"]], axis=1)
    wh = jnp.pad(wh, ((0, Cp - C_feat), (0, Np - n_total))).astype(jnp.float32)
    bh = jnp.concatenate([params["b1"].reshape(1, n1),
                          params["b2"].reshape(1, n2),
                          params["b3"].reshape(1, n3)], axis=1)
    bh = jnp.pad(bh, ((0, 0), (0, Np - n_total))).astype(jnp.float32)

    kernel = functools.partial(_fused_kernel, inv_hw=1.0 / float(HW))

    logits = pl.pallas_call(
        kernel,
        out_shape=jax.ShapeDtypeStruct((B, 1, Np), jnp.float32),
        grid_spec=pltpu.PrefetchScalarGridSpec(
            num_scalar_prefetch=0,
            grid=(B,),
            in_specs=[
                # One whole image's im2col block per grid step (pipelined DMA).
                pl.BlockSpec((1, HW, Kp), lambda b: (b, 0, 0)),
                # Weights stay VMEM-resident across the whole grid.
                pl.BlockSpec((Kp, Cp), lambda b: (0, 0)),
                pl.BlockSpec((1, Cp), lambda b: (0, 0)),
                pl.BlockSpec((Cp, Np), lambda b: (0, 0)),
                pl.BlockSpec((1, Np), lambda b: (0, 0)),
            ],
            out_specs=pl.BlockSpec((1, 1, Np), lambda b: (b, 0, 0)),
        ),
        compiler_params=pltpu.CompilerParams(
            dimension_semantics=("parallel",),
            vmem_limit_bytes=32 * 1024 * 1024,
        ),
    )(x_cols, w_taps, b2d, wh, bh)

    logits = logits.reshape(B, Np)
    return (logits[:, :n1],
            logits[:, n1:n1 + n2],
            logits[:, n1 + n2:n_total])


# ----------------------------------------------------------------------------
# Params / reference
# ----------------------------------------------------------------------------
def init_params(key, C_in=4, C_feat=32, n1=3, n2=4, n3=6):
    ks = jax.random.split(key, 8)
    scale = 0.1
    return {
        "w_conv": scale * jax.random.normal(ks[0], (C_feat, C_in, 3, 3), jnp.float32),
        "b_conv": scale * jax.random.normal(ks[1], (C_feat,), jnp.float32),
        "w1": scale * jax.random.normal(ks[2], (C_feat, n1), jnp.float32),
        "b1": scale * jax.random.normal(ks[3], (1, n1), jnp.float32),
        "w2": scale * jax.random.normal(ks[4], (C_feat, n2), jnp.float32),
        "b2": scale * jax.random.normal(ks[5], (1, n2), jnp.float32),
        "w3": scale * jax.random.normal(ks[6], (C_feat, n3), jnp.float32),
        "b3": scale * jax.random.normal(ks[7], (1, n3), jnp.float32),
    }


def reference_forward(image, params):
    """Pure-JAX f32 reference (conv3x3 pad=1 + ReLU + GAP + 3 linear heads)."""
    x = jnp.transpose(image, (0, 2, 3, 1))                         # NHWC
    w = jnp.transpose(params["w_conv"], (2, 3, 1, 0))              # HWIO
    conv = jax.lax.conv_general_dilated(
        x, w, window_strides=(1, 1), padding="SAME",
        dimension_numbers=("NHWC", "HWIO", "NHWC"))
    conv = jnp.maximum(conv + params["b_conv"], 0.0)
    feats = jnp.mean(conv, axis=(1, 2))                            # [B, C_feat]
    o1 = feats @ params["w1"] + params["b1"]
    o2 = feats @ params["w2"] + params["b2"]
    o3 = feats @ params["w3"] + params["b3"]
    return o1, o2, o3


if __name__ == "__main__":
    key = jax.random.PRNGKey(0)
    k_img, k_par = jax.random.split(key)

    B, C_in, H, W = 2, 4, 16, 16
    image = jax.random.normal(k_img, (B, C_in, H, W), jnp.float32)   # NCHW input
    params = init_params(k_par, C_in=C_in)

    fwd = jax.jit(my_classifier_model_forward)
    out1, out2, out3 = fwd(image, params)
    jax.block_until_ready((out1, out2, out3))

    assert out1.shape == (B, 3) and out2.shape == (B, 4) and out3.shape == (B, 6)

    # Numerical check against the f32 reference (bf16 conv operands -> loose atol).
    r1, r2, r3 = reference_forward(image, params)
    assert jnp.allclose(out1, r1, atol=1e-2), float(jnp.max(jnp.abs(out1 - r1)))
    assert jnp.allclose(out2, r2, atol=1e-2), float(jnp.max(jnp.abs(out2 - r2)))
    assert jnp.allclose(out3, r3, atol=1e-2), float(jnp.max(jnp.abs(out3 - r3)))

    print("KERNEL_OK")
</pallas_src>

<mosaic_0001>
module attributes {stable_mosaic.version = 11 : i64} {
  func.func @_fused_kernel(%arg0: i32, %arg1: memref<1x256x128xbf16, #tpu.memory_space<vmem>>, %arg2: memref<128x128xbf16, #tpu.memory_space<vmem>>, %arg3: memref<1x128xf32, #tpu.memory_space<vmem>>, %arg4: memref<128x128xf32, #tpu.memory_space<vmem>>, %arg5: memref<1x128xf32, #tpu.memory_space<vmem>>, %arg6: memref<1x1x128xf32, #tpu.memory_space<vmem>>) attributes {dimension_semantics = [#tpu.dimension_semantics<parallel>], iteration_bounds = array<i64: 2>, scalar_prefetch = 0 : i64, scratch_operands = 0 : i64, tpu.core_type = #tpu.core_type<tc>, window_params = [{transform_indices = @transform_0, window_bounds = array<i64: 1, 256, 128>}, {pipeline_mode = #tpu.pipeline_mode<synchronous>, transform_indices = @transform_1, window_bounds = array<i64: 128, 128>}, {pipeline_mode = #tpu.pipeline_mode<synchronous>, transform_indices = @transform_2, window_bounds = array<i64: 1, 128>}, {pipeline_mode = #tpu.pipeline_mode<synchronous>, transform_indices = @transform_3, window_bounds = array<i64: 128, 128>}, {pipeline_mode = #tpu.pipeline_mode<synchronous>, transform_indices = @transform_4, window_bounds = array<i64: 1, 128>}, {transform_indices = @transform_5, window_bounds = array<i64: 1, 1, 128>}]} {
    %c0 = arith.constant 0 : index
    %c0_0 = arith.constant 0 : index
    %c0_1 = arith.constant 0 : index
    %0 = vector.load %arg1[%c0, %c0_0, %c0_1] : memref<1x256x128xbf16, #tpu.memory_space<vmem>>, vector<1x256x128xbf16>
    %1 = vector.shape_cast %0 : vector<1x256x128xbf16> to vector<256x128xbf16>
    %c0_2 = arith.constant 0 : index
    %c0_3 = arith.constant 0 : index
    %2 = vector.load %arg2[%c0_2, %c0_3] : memref<128x128xbf16, #tpu.memory_space<vmem>>, vector<128x128xbf16>
    %cst = arith.constant dense<0.000000e+00> : vector<256x128xf32>
    %3 = tpu.matmul %1, %2, %cst {dimension_numbers = #tpu.dot_dimension_numbers<[1], [0], [0], [1], [0, 0, 1, 1], [], []>} : vector<256x128xbf16>, vector<128x128xbf16>, vector<256x128xf32> -> vector<256x128xf32>
    %c0_4 = arith.constant 0 : index
    %c0_5 = arith.constant 0 : index
    %4 = vector.load %arg3[%c0_4, %c0_5] : memref<1x128xf32, #tpu.memory_space<vmem>>, vector<1x128xf32>
    %5 = vector.broadcast %4 : vector<1x128xf32> to vector<256x128xf32>
    %6 = arith.addf %3, %5 : vector<256x128xf32>
    %cst_6 = arith.constant 0.000000e+00 : f32
    %7 = vector.broadcast %cst_6 : f32 to vector<256x128xf32>
    %8 = arith.maximumf %6, %7 : vector<256x128xf32>
    %cst_7 = arith.constant dense<0.000000e+00> : vector<128xf32>
    %9 = vector.multi_reduction <add>, %8, %cst_7 [0] : vector<256x128xf32> to vector<128xf32>
    %10 = vector.shape_cast %9 : vector<128xf32> to vector<1x128xf32>
    %cst_8 = arith.constant 3.906250e-03 : f32
    %11 = vector.broadcast %cst_8 : f32 to vector<1x128xf32>
    %12 = arith.mulf %10, %11 : vector<1x128xf32>
    %c0_9 = arith.constant 0 : index
    %c0_10 = arith.constant 0 : index
    %13 = vector.load %arg4[%c0_9, %c0_10] : memref<128x128xf32, #tpu.memory_space<vmem>>, vector<128x128xf32>
    %cst_11 = arith.constant dense<0.000000e+00> : vector<1x128xf32>
    %14 = tpu.matmul %12, %13, %cst_11 {dimension_numbers = #tpu.dot_dimension_numbers<[1], [0], [0], [1], [0, 0, 1, 1], [], []>} : vector<1x128xf32>, vector<128x128xf32>, vector<1x128xf32> -> vector<1x128xf32>
    %c0_12 = arith.constant 0 : index
    %c0_13 = arith.constant 0 : index
    %15 = vector.load %arg5[%c0_12, %c0_13] : memref<1x128xf32, #tpu.memory_space<vmem>>, vector<1x128xf32>
    %16 = arith.addf %14, %15 : vector<1x128xf32>
    %c0_14 = arith.constant 0 : index
    %c0_15 = arith.constant 0 : index
    %c0_16 = arith.constant 0 : index
    %17 = vector.load %arg6[%c0_14, %c0_15, %c0_16] : memref<1x1x128xf32, #tpu.memory_space<vmem>>, vector<1x1x128xf32>
    %18 = vector.shape_cast %17 : vector<1x1x128xf32> to vector<1x128xf32>
    %19 = vector.shape_cast %16 : vector<1x128xf32> to vector<1x1x128xf32>
    tpu.vector_store %arg6[%c0_14, %c0_15, %c0_16], %19 {strides = array<i32>} : memref<1x1x128xf32, #tpu.memory_space<vmem>>, vector<1x1x128xf32>,
    return
  }
  func.func @transform_0(%arg0: i32) -> (i32, i32, i32) {
    %c0_i32 = arith.constant 0 : i32
    %c0_i32_0 = arith.constant 0 : i32
    %c0_i32_1 = arith.constant 0 : i32
    return %arg0, %c0_i32, %c0_i32_0 : i32, i32, i32
  }
  func.func @transform_1(%arg0: i32) -> (i32, i32) {
    %c0_i32 = arith.constant 0 : i32
    %c0_i32_0 = arith.constant 0 : i32
    %c0_i32_1 = arith.constant 0 : i32
    return %c0_i32, %c0_i32_0 : i32, i32
  }
  func.func @transform_2(%arg0: i32) -> (i32, i32) {
    %c0_i32 = arith.constant 0 : i32
    %c0_i32_0 = arith.constant 0 : i32
    %c0_i32_1 = arith.constant 0 : i32
    return %c0_i32, %c0_i32_0 : i32, i32
  }
  func.func @transform_3(%arg0: i32) -> (i32, i32) {
    %c0_i32 = arith.constant 0 : i32
    %c0_i32_0 = arith.constant 0 : i32
    %c0_i32_1 = arith.constant 0 : i32
    return %c0_i32, %c0_i32_0 : i32, i32
  }
  func.func @transform_4(%arg0: i32) -> (i32, i32) {
    %c0_i32 = arith.constant 0 : i32
    %c0_i32_0 = arith.constant 0 : i32
    %c0_i32_1 = arith.constant 0 : i32
    return %c0_i32, %c0_i32_0 : i32, i32
  }
  func.func @transform_5(%arg0: i32) -> (i32, i32, i32) {
    %c0_i32 = arith.constant 0 : i32
    %c0_i32_0 = arith.constant 0 : i32
    %c0_i32_1 = arith.constant 0 : i32
    return %arg0, %c0_i32, %c0_i32_0 : i32, i32, i32
  }
}

</mosaic_0001>

<bundles_post_ra>
// kernel: my_classifier_model_forward.1
= control target key start
LH: loop header
LB: loop body
LE: loop exit
PB: predicated region body
PF: predicated region fallthrough
CT: control target
= control target key end

     0   :  { %s1036_s18 = smov 0   ;;  %s1199_s0 = inlined_call_operand.vmem [shape: bf16[2,256,128], index: 0, kind: input, shape index: {}]   ;;  %s1200_s1 = inlined_call_operand.vmem [shape: bf16[128,128], index: 1, kind: input, shape index: {}]   ;;  %s1201_s2 = inlined_call_operand.vmem [shape: f32[1,128], index: 2, kind: input, shape index: {}]   ;;  %s1202_s3 = inlined_call_operand.vmem [shape: f32[128,128], index: 3, kind: input, shape index: {}]   ;;  %s1203_s4 = inlined_call_operand.vmem [shape: f32[1,128], index: 4, kind: input, shape index: {}]   ;;  %s1204_s5 = inlined_call_operand.vmem [shape: f32[2,1,128], index: 5, kind: output, shape index: {}]  }
   0x1 LB: > { %s787_s19 = sadd.s32 4294967295, %s1002_s18   ;;  %p791_p0 = scmp.ge.s32.totalorder %s1002_s18, 1  ;;  %s1002_s18 = sphi %s1036_s18, %s15_s18  }
   0x2   : > { %p187_p1 = scmp.lt.s32.totalorder %s1002_s18, 3 }
   0x4   : > { %p188_p2 = pnand %p791_p0, %p187_p1 }
   0x5   : > { %p213_p3 = scmp.lt.s32.totalorder (!%p188_p2), %s787_s19, 1 }
   0x6   : > { %191 = sbr.rel (%p188_p2) target bundleno = 519 (0x207), region = 40 }
   0xb   : > { %v972_v0 = vld [vmem:[%s1200_s1 + $0x38] sm:$0xff]   ;;  %v973_v1 = vld [vmem:[%s1200_s1 + $0x30] sm:$0xff]   ;;  %s1206_s19 = smov (!%p213_p3, %s787_s19), 1  ;;  %v974_v2 = vld [vmem:[%s1200_s1 + $0x28] sm:$0xff]   ;;  %v1004_v24 = vmov 0.0   ;;  %vm1005_vm0 = vmmov 0  }
   0xc   : > { %863 = vmatprep.subr.bf16.mxu0 %v972_v0  ;;  %946 = vmatprep.subr.bf16.mxu1 %v972_v0  ;;  %s821_s26 = sshll.u32 %s1206_s19, 7  ;;  %v975_v3 = vld [vmem:[%s1200_s1 + $0x20] sm:$0xff]   ;;  %v976_v5 = vld [vmem:[%s1200_s1 + $0x18] sm:$0xff]   ;;  %v977_v6 = vld [vmem:[%s1200_s1 + $0x10] sm:$0xff]   ;;  %s220_s7 = scalar_lea.vmem %s1204_s5, %s1206_s19 }
   0xd   : > { %864 = vmatpush3.bf16.msra.mxu0 %v972_v0  ;;  %954 = vmatpush3.bf16.msra.mxu1 %v972_v0  ;;  %s1059_s29 = scalar_lea.vmem %s1199_s0, %s821_s26  ;;  %v978_v8 = vld [vmem:[%s1200_s1 + $0x8] sm:$0xff]   ;;  %v979_v9 = vld [vmem:[%s1200_s1] sm:$0xff]   ;;  %v667_v25 = vld [vmem:[%s1202_s3 + $0x78] sm:$0xff] }
   0xe   : > { %865 = vmatprep.subr.bf16.mxu0 %v973_v1  ;;  %947 = vmatprep.subr.bf16.mxu1 %v973_v1  ;;  %v980_v4 = vld [vmem:[%s1059_s29] sm:$0xff]   ;;  %v981_v10 = vld [vmem:[%s1059_s29 + $0x8] sm:$0xff]   ;;  %v982_v12 = vld [vmem:[%s1059_s29 + $0x10] sm:$0xff]  }
   0xf   : > { %879 = vmatprep.mubr.bf16.mxu0 %v980_v4  ;;  %v988_v7 = vld [vmem:[%s1059_s29 + $0x40] sm:$0xff]   ;;  %v989_v11 = vld [vmem:[%s1059_s29 + $0x48] sm:$0xff]   ;;  %v990_v13 = vld [vmem:[%s1059_s29 + $0x50] sm:$0xff]  }
  0x10   : > { %895 = vmatprep.mubr.bf16.mxu1 %v988_v7  ;;  %v983_v14 = vld [vmem:[%s1059_s29 + $0x18] sm:$0xff]   ;;  %v984_v16 = vld [vmem:[%s1059_s29 + $0x20] sm:$0xff]   ;;  %v985_v18 = vld [vmem:[%s1059_s29 + $0x28] sm:$0xff]  }
  0x11   : > { %866 = vmatpush3.bf16.msra.mxu0 %v973_v1  ;;  %955 = vmatpush3.bf16.msra.mxu1 %v973_v1  ;;  %v991_v15 = vld [vmem:[%s1059_s29 + $0x58] sm:$0xff]   ;;  %v992_v17 = vld [vmem:[%s1059_s29 + $0x60] sm:$0xff]   ;;  %v993_v19 = vld [vmem:[%s1059_s29 + $0x68] sm:$0xff]  }
  0x12   : > { %867 = vmatprep.subr.bf16.mxu0 %v974_v2  ;;  %948 = vmatprep.subr.bf16.mxu1 %v974_v2  ;;  %v986_v20 = vld [vmem:[%s1059_s29 + $0x30] sm:$0xff]   ;;  %v987_v22 = vld [vmem:[%s1059_s29 + $0x38] sm:$0xff]   ;;  %v665_v27 = vld [vmem:[%s1202_s3 + $0x68] sm:$0xff] }
  0x13   : > { %v994_v21 = vld [vmem:[%s1059_s29 + $0x70] sm:$0xff]   ;;  %v995_v23 = vld [vmem:[%s1059_s29 + $0x78] sm:$0xff]   ;;  %v664_v28 = vld [vmem:[%s1202_s3 + $0x60] sm:$0xff] }
  0x14   : > { %v666_v26 = vld [vmem:[%s1202_s3 + $0x70] sm:$0xff]  ;;  %v663_v29 = vld [vmem:[%s1202_s3 + $0x58] sm:$0xff]  ;;  %v661_v31 = vld [vmem:[%s1202_s3 + $0x48] sm:$0xff] }
  0x15   : > { %868 = vmatpush3.bf16.msra.mxu0 %v974_v2  ;;  %956 = vmatpush3.bf16.msra.mxu1 %v974_v2  ;;  %v662_v30 = vld [vmem:[%s1202_s3 + $0x50] sm:$0xff]  ;;  %v660_v32 = vld [vmem:[%s1202_s3 + $0x40] sm:$0xff]  ;;  %v659_v33 = vld [vmem:[%s1202_s3 + $0x38] sm:$0xff] }
  0x16   : > { %869 = vmatprep.subr.bf16.mxu0 %v975_v3  ;;  %949 = vmatprep.subr.bf16.mxu1 %v975_v3  ;;  %v658_v34 = vld [vmem:[%s1202_s3 + $0x30] sm:$0xff]  ;;  %v657_v35 = vld [vmem:[%s1202_s3 + $0x28] sm:$0xff]  ;;  %v656_v36 = vld [vmem:[%s1202_s3 + $0x20] sm:$0xff] }
  0x17   : > { %v655_v37 = vld [vmem:[%s1202_s3 + $0x18] sm:$0xff]  ;;  %v654_v38 = vld [vmem:[%s1202_s3 + $0x10] sm:$0xff]  ;;  %v653_v39 = vld [vmem:[%s1202_s3 + $0x8] sm:$0xff] }
  0x18   : > { %v652_v40 = vld [vmem:[%s1202_s3] sm:$0xff] }
  0x19   : > { %870 = vmatpush3.bf16.msra.mxu0 %v975_v3  ;;  %957 = vmatpush3.bf16.msra.mxu1 %v975_v3  ;;  %v1147_v45 = vld [vmem:[%s1201_s2] ss:$0 sm:$0xff] }
  0x1a   : > { %871 = vmatprep.subr.bf16.mxu0 %v976_v5  ;;  %950 = vmatprep.subr.bf16.mxu1 %v976_v5 }
  0x1d   : > { %872 = vmatpush3.bf16.msra.mxu0 %v976_v5  ;;  %958 = vmatpush3.bf16.msra.mxu1 %v976_v5 }
  0x1e   : > { %873 = vmatprep.subr.bf16.mxu0 %v977_v6  ;;  %951 = vmatprep.subr.bf16.mxu1 %v977_v6 }
  0x21   : > { %874 = vmatpush3.bf16.msra.mxu0 %v977_v6  ;;  %959 = vmatpush3.bf16.msra.mxu1 %v977_v6 }
  0x22   : > { %875 = vmatprep.subr.bf16.mxu0 %v978_v8  ;;  %952 = vmatprep.subr.bf16.mxu1 %v978_v8 }
  0x25   : > { %876 = vmatpush3.bf16.msra.mxu0 %v978_v8  ;;  %960 = vmatpush3.bf16.msra.mxu1 %v978_v8 }
  0x26   : > { %877 = vmatprep.subr.bf16.mxu0 %v979_v9  ;;  %953 = vmatprep.subr.bf16.mxu1 %v979_v9 }
  0x29   : > { %878 = vmatpush3.bf16.msra.mxu0 %v979_v9  ;;  %961 = vmatpush3.bf16.msra.mxu1 %v979_v9 }
  0x2a   : > { %911 = vmatprep.subr.mxu1 %v1004_v24 }
  0x2c   : > { %880 = vmatmul.mubr.bf16.vlgmr.msra.gmra.mxu0 %v981_v10  ;;  %896 = vmatmul.mubr.bf16.vlgmr.msra.gmra.mxu1 %v989_v11 }
  0x2d   : > { %883 = vmatprep.mubr.bf16.mxu0 %v982_v12  ;;  %899 = vmatprep.mubr.bf16.mxu1 %v990_v13 }
  0x2e   : > { %912 = vmatpush3.msra.mxu1 %v667_v25 }
  0x2f   : > { %913 = vmatprep.subr.mxu1 %v1004_v24 }
  0x30   : > { %914 = vmatpush3.msra.mxu1 %v666_v26 }
  0x31   : > { %915 = vmatprep.subr.mxu1 %v1004_v24 }
  0x32   : > { %916 = vmatpush3.msra.mxu1 %v665_v27 }
  0x33   : > { %917 = vmatprep.subr.mxu1 %v1004_v24 }
  0x34   : > { %884 = vmatmul.mubr.bf16.gmra.mxu0 %v983_v14  ;;  %900 = vmatmul.mubr.bf16.gmra.mxu1 %v991_v15 }
  0x35   : > { %887 = vmatprep.mubr.bf16.mxu0 %v984_v16  ;;  %903 = vmatprep.mubr.bf16.mxu1 %v992_v17 }
  0x36   : > { %918 = vmatpush3.msra.mxu1 %v664_v28 }
  0x37   : > { %919 = vmatprep.subr.mxu1 %v1004_v24 }
  0x38   : > { %920 = vmatpush3.msra.mxu1 %v663_v29 }
  0x39   : > { %921 = vmatprep.subr.mxu1 %v1004_v24 }
  0x3a   : > { %922 = vmatpush3.msra.mxu1 %v662_v30 }
  0x3b   : > { %923 = vmatprep.subr.mxu1 %v1004_v24 }
  0x3c   : > { %888 = vmatmul.mubr.bf16.gmra.mxu0 %v985_v18  ;;  %904 = vmatmul.mubr.bf16.gmra.mxu1 %v993_v19 }
  0x3d   : > { %891 = vmatprep.mubr.bf16.mxu0 %v986_v20  ;;  %907 = vmatprep.mubr.bf16.mxu1 %v994_v21 }
  0x3e   : > { %924 = vmatpush3.msra.mxu1 %v661_v31 }
  0x3f   : > { %925 = vmatprep.subr.mxu1 %v1004_v24 }
  0x40   : > { %926 = vmatpush3.msra.mxu1 %v660_v32 }
  0x41   : > { %927 = vmatprep.subr.mxu1 %v1004_v24 }
  0x42   : > { %928 = vmatpush3.msra.mxu1 %v659_v33 }
  0x43   : > { %929 = vmatprep.subr.mxu1 %v1004_v24 }
  0x44   : > { %892 = vmatmul.mubr.bf16.gmra.mxu0 %v987_v22  ;;  %908 = vmatmul.mubr.bf16.gmra.mxu1 %v995_v23 }
  0x45   : > { %930 = vmatpush3.msra.mxu1 %v658_v34  ;;  %943 = vmatprep.mubr.msk.f32.mxu1 %vm1005_vm0, %v1004_v24 }
  0x46   : > { %931 = vmatprep.subr.mxu1 %v1004_v24 }
  0x47   : > { %932 = vmatpush3.msra.mxu1 %v657_v35 }
  0x48   : > { %933 = vmatprep.subr.mxu1 %v1004_v24 }
  0x49   : > { %934 = vmatpush3.msra.mxu1 %v656_v36 }
  0x4a   : > { %935 = vmatprep.subr.mxu1 %v1004_v24 }
  0x4b   : > { %936 = vmatpush3.msra.mxu1 %v655_v37 }
  0x4c   : > { %937 = vmatprep.subr.mxu1 %v1004_v24 }
  0x4d   : > { %938 = vmatpush3.msra.mxu1 %v654_v38 }
  0x4e   : > { %939 = vmatprep.subr.mxu1 %v1004_v24 }
  0x4f   : > { %940 = vmatpush3.msra.mxu1 %v653_v39 }
  0x50   : > { %941 = vmatprep.subr.mxu1 %v1004_v24 }
  0x51   : > { %942 = vmatpush3.msra.mxu1 %v652_v40 }
  0xec   : > { %v881_v41 = vpop.f32.mrf.mxu0  ;;  %v1140_v42 = vpop.f32.mrf.mxu1 }
  0xed   : > { %v464_v50 = vadd.f32 %v881_v41, %v1147_v45 }
  0xee   : > { %v455_v43 = vpop.f32.mrf.mxu0  ;;  %v1142_v44 = vpop.f32.mrf.mxu1 }
  0xef   : > { %v456_v47 = vadd.f32 %v1147_v45, %v455_v43  ;;  %v584_v58 = vmax.f32 %v464_v50, 0.0 }
  0xf0   : > { %v882_v46 = vpop.f32.mrf.mxu0  ;;  %v1150_v49 = vpop.f32.mrf.mxu1 }
  0xf1   : > { %v582_v53 = vmax.f32 %v456_v47, 0.0  ;;  %v467_v54 = vadd.f32 %v882_v46, %v1147_v45 }
  0xf2   : > { %v458_v48 = vpop.f32.mrf.mxu0  ;;  %v522_v57 = vpop.f32.mrf.mxu1 }
  0xf3   : > { %v459_v51 = vadd.f32 %v1147_v45, %v458_v48  ;;  %v585_v62 = vmax.f32 %v467_v54, 0.0 }
  0xf4   : > { %v885_v52 = vpop.f32.mrf.mxu0  ;;  %v1156_v1 = vpop.f32.mrf.mxu1 }
  0xf5   : > { %v583_v55 = vmax.f32 %v459_v51, 0.0  ;;  %v480_v2 = vadd.f32 %v885_v52, %v1147_v45  ;;  %v520_v51 = vadd.f32 %v1147_v45, %v1142_v44 }
  0xf6   : > { %v471_v56 = vpop.f32.mrf.mxu0  ;;  %v535_v11 = vpop.f32.mrf.mxu1 }
  0xf7   : > { %v614_v59 = vadd.f32 %v583_v55, %v582_v53  ;;  %v472_v60 = vadd.f32 %v1147_v45, %v471_v56  ;;  %v588_v12 = vmax.f32 %v480_v2, 0.0  ;;  %v523_v55 = vadd.f32 %v1147_v45, %v522_v57 }
  0xf8   : > { %v886_v61 = vpop.f32.mrf.mxu0  ;;  %v902_v19 = vpop.f32.mrf.mxu1  ;;  %v536_v44 = vadd.f32 %v1147_v45, %v535_v11 }
  0xf9   : > { %v615_v63 = vadd.f32 %v614_v59, %v584_v58  ;;  %v586_v3 = vmax.f32 %v472_v60, 0.0  ;;  %v483_v8 = vadd.f32 %v886_v61, %v1147_v45  ;;  %v528_v58 = vadd.f32 %v1140_v42, %v1147_v45 }
  0xfa   : > { %v474_v0 = vpop.f32.mrf.mxu0  ;;  %v538_v29 = vpop.f32.mrf.mxu1  ;;  %v598_v59 = vmax.f32 %v520_v51, 0.0  ;;  %v531_v61 = vadd.f32 %v1150_v49, %v1147_v45  ;;  %v544_v42 = vadd.f32 %v1156_v1, %v1147_v45  ;;  %v547_v49 = vadd.f32 %v902_v19, %v1147_v45 }
  0xfb   : > { %v616_v4 = vadd.f32 %v615_v63, %v585_v62  ;;  %v475_v5 = vadd.f32 %v1147_v45, %v474_v0  ;;  %v589_v16 = vmax.f32 %v483_v8, 0.0  ;;  %v599_v62 = vmax.f32 %v523_v55, 0.0 }
  0xfc   : > { %v889_v6 = vpop.f32.mrf.mxu0  ;;  %v905_v37 = vpop.f32.mrf.mxu1  ;;  %v600_v2 = vmax.f32 %v528_v58, 0.0  ;;  %v539_v57 = vadd.f32 %v1147_v45, %v538_v29  ;;  %v605_v11 = vmax.f32 %v547_v49, 0.0 }
  0xfd   : > { %v617_v7 = vadd.f32 %v616_v4, %v586_v3  ;;  %v587_v9 = vmax.f32 %v475_v5, 0.0  ;;  %v496_v20 = vadd.f32 %v889_v6, %v1147_v45  ;;  %v601_v4 = vmax.f32 %v531_v61, 0.0 }
  0xfe   : > { %v487_v10 = vpop.f32.mrf.mxu0  ;;  %v551_v48 = vpop.f32.mrf.mxu1 }
  0xff   : > { %v618_v13 = vadd.f32 %v617_v7, %v587_v9  ;;  %v488_v14 = vadd.f32 %v1147_v45, %v487_v10  ;;  %v592_v30 = vmax.f32 %v496_v20, 0.0  ;;  %v602_v7 = vmax.f32 %v536_v44, 0.0 }
 0x100   : > { %v890_v15 = vpop.f32.mrf.mxu0  ;;  %v906_v56 = vpop.f32.mrf.mxu1  ;;  %v603_v10 = vmax.f32 %v539_v57, 0.0  ;;  %v560_v20 = vadd.f32 %v905_v37, %v1147_v45 }
 0x101   : > { %v619_v17 = vadd.f32 %v618_v13, %v588_v12  ;;  %v590_v21 = vmax.f32 %v488_v14, 0.0  ;;  %v499_v26 = vadd.f32 %v890_v15, %v1147_v45  ;;  %v604_v13 = vmax.f32 %v544_v42, 0.0 }
 0x102   : > { %v490_v18 = vpop.f32.mrf.mxu0  ;;  %v554_v0 = vpop.f32.mrf.mxu1  ;;  %v552_v15 = vadd.f32 %v1147_v45, %v551_v48 }
 0x103   : > { %v620_v22 = vadd.f32 %v619_v17, %v589_v16  ;;  %v491_v23 = vadd.f32 %v1147_v45, %v490_v18  ;;  %v593_v34 = vmax.f32 %v499_v26, 0.0  ;;  %v555_v17 = vadd.f32 %v1147_v45, %v554_v0 }
 0x104   : > { %v893_v24 = vpop.f32.mrf.mxu0  ;;  %v909_v6 = vpop.f32.mrf.mxu1 }
 0x105   : > { %v621_v25 = vadd.f32 %v620_v22, %v590_v21  ;;  %v591_v27 = vmax.f32 %v491_v23, 0.0  ;;  %v512_v38 = vadd.f32 %v893_v24, %v1147_v45  ;;  %v606_v21 = vmax.f32 %v552_v15, 0.0 }
 0x106   : > { %v503_v28 = vpop.f32.mrf.mxu0  ;;  %v567_v12 = vpop.f32.mrf.mxu1  ;;  %v563_v23 = vadd.f32 %v906_v56, %v1147_v45  ;;  %v607_v24 = vmax.f32 %v555_v17, 0.0 }
 0x107   : > { %v622_v31 = vadd.f32 %v621_v25, %v591_v27  ;;  %v504_v32 = vadd.f32 %v1147_v45, %v503_v28  ;;  %v596_v50 = vmax.f32 %v512_v38, 0.0  ;;  %v608_v25 = vmax.f32 %v560_v20, 0.0 }
 0x108   : > { %v894_v33 = vpop.f32.mrf.mxu0  ;;  %v910_v18 = vpop.f32.mrf.mxu1  ;;  %v568_v27 = vadd.f32 %v1147_v45, %v567_v12  ;;  %v609_v28 = vmax.f32 %v563_v23, 0.0 }
 0x109   : > { %v623_v35 = vadd.f32 %v622_v31, %v592_v30  ;;  %v594_v39 = vmax.f32 %v504_v32, 0.0  ;;  %v515_v46 = vadd.f32 %v894_v33, %v1147_v45  ;;  %v576_v31 = vadd.f32 %v909_v6, %v1147_v45 }
 0x10a   : > { %v506_v36 = vpop.f32.mrf.mxu0  ;;  %v570_v19 = vpop.f32.mrf.mxu1  ;;  %v610_v32 = vmax.f32 %v568_v27, 0.0 }
 0x10b   : > { %v624_v40 = vadd.f32 %v623_v35, %v593_v34  ;;  %v507_v41 = vadd.f32 %v1147_v45, %v506_v36  ;;  %v597_v53 = vmax.f32 %v515_v46, 0.0  ;;  %v571_v30 = vadd.f32 %v1147_v45, %v570_v19 }
 0x10c   : > { %v579_v35 = vadd.f32 %v910_v18, %v1147_v45  ;;  %v612_v37 = vmax.f32 %v576_v31, 0.0 }
 0x10d   : > { %v625_v43 = vadd.f32 %v624_v40, %v594_v39  ;;  %v595_v47 = vmax.f32 %v507_v41, 0.0  ;;  %v611_v36 = vmax.f32 %v571_v30, 0.0 }
 0x10e   : > { %v613_v39 = vmax.f32 %v579_v35, 0.0 }
 0x10f   : > { %v626_v52 = vadd.f32 %v625_v43, %v595_v47 }
 0x111   : > { %v627_v54 = vadd.f32 %v626_v52, %v596_v50 }
 0x113   : > { %v628_v60 = vadd.f32 %v627_v54, %v597_v53  ;;  %v668_v53 = vld [vmem:[%s1203_s4] sm:$0x1] }
 0x115   : > { %v629_v63 = vadd.f32 %v628_v60, %v598_v59 }
 0x117   : > { %v630_v3 = vadd.f32 %v629_v63, %v599_v62 }
 0x119   : > { %v631_v5 = vadd.f32 %v630_v3, %v600_v2 }
 0x11b   : > { %v632_v8 = vadd.f32 %v631_v5, %v601_v4 }
 0x11d   : > { %v633_v9 = vadd.f32 %v632_v8, %v602_v7 }
 0x11f   : > { %v634_v14 = vadd.f32 %v633_v9, %v603_v10 }
 0x121   : > { %v635_v16 = vadd.f32 %v634_v14, %v604_v13 }
 0x123   : > { %v636_v1 = vadd.f32 %v635_v16, %v605_v11 }
 0x125   : > { %v637_v22 = vadd.f32 %v636_v1, %v606_v21 }
 0x127   : > { %v638_v26 = vadd.f32 %v637_v22, %v607_v24 }
 0x129   : > { %v639_v29 = vadd.f32 %v638_v26, %v608_v25 }
 0x12b   : > { %v640_v33 = vadd.f32 %v639_v29, %v609_v28 }
 0x12d   : > { %v641_v34 = vadd.f32 %v640_v33, %v610_v32 }
 0x12f   : > { %v642_v38 = vadd.f32 %v641_v34, %v611_v36 }
 0x131   : > { %v643_v40 = vadd.f32 %v642_v38, %v612_v37 }
 0x133   : > { %v644_v41 = vadd.f32 %v643_v40, %v613_v39 }
 0x135   : > { %v645_v43 = vrot.slane %v644_v41, 4 }
 0x137   : > { %v646_v46 = vadd.f32 %v645_v43, %v644_v41 }
 0x139   : > { %v647_v47 = vrot.slane %v646_v46, 2 }
 0x13b   : > { %v648_v48 = vadd.f32 %v647_v47, %v646_v46 }
 0x13d   : > { %v649_v50 = vrot.slane %v648_v48, 1 }
 0x13f   : > { %v650_v51 = vadd.f32 %v649_v50, %v648_v48 }
 0x141   : > { %v651_v52 = vmul.f32 0.00390625, %v650_v51 }
 0x143   : > { %944 = vmatmul.mubr.f32.vlgmr.msra.gmra.mxu1 %v651_v52 }
 0x203   : > { %v735_v45 = vpop.f32.mrf.mxu1 }
 0x204   : > { %v736_v54 = vadd.f32 %v735_v45, %v668_v53 }
 0x205   : > { %v945_v55 = vpop.f32.mrf.mxu1 }
 0x206   : > { %739 = vst [vmem:[%s220_s7] sm:$0x1] %v736_v54 }
 0x207 PF: > { %s15_s18 = sadd.s32 1, %s1002_s18  }
 0x208   : > { %p12_p4 = scmp.ge.s32.totalorder %s15_s18, 4  }
 0x20a   :  { %14 = sbr.rel (!%p12_p4) target bundleno = 1 (0x1), region = 70 }

</bundles_post_ra>
